<compile_context>
chip_gen: v5e
topology: v5e:2x2
jax: 0.10.0
libtpu: 0.0.40
codegen_flags: <defaults>
</compile_context>

<pallas_src>
import functools

import jax
import jax.numpy as jnp
from jax import lax
from jax.experimental import pallas as pl
from jax.experimental.pallas import tpu as pltpu


def _round_up(x, m):
    return ((x + m - 1) // m) * m


def _mosaic_params():
    return pltpu.CompilerParams(
        dimension_semantics=("arbitrary",),        # single reduction grid axis
        vmem_limit_bytes=32 * 1024 * 1024,         # safe on v5e/v6e/v7x
    )


# ----------------------------------------------------------------------------
# MMD with information-diffusion kernel, tiled over Gram row-blocks.
# ----------------------------------------------------------------------------
def _acos(g):
    # acos(g) == atan2(sqrt((1-g)(1+g)), g) for g in [-1, 1]; EUP-class ops.
    return jnp.arctan2(jnp.sqrt((1.0 - g) * (1.0 + g)), g)


def _diffusion(g, t):
    # Matches the reference exactly: -torch.acos(a).pow(2).exp() / tmpt
    a = _acos(g)
    return -jnp.exp(a * a) / t


def mmd_kernel(pred_ref, targ_ref, out_ref, q_ref, *, t, eps, m, m_pad, tm):
    i = pl.program_id(0)

    @pl.when(i == 0)
    def _init():
        out_ref[...] = jnp.zeros_like(out_ref)
        px = jnp.clip(pred_ref[...].astype(jnp.float32), eps, 1.0)
        py = jnp.clip(targ_ref[...].astype(jnp.float32), eps, 1.0)
        # q = [qx; qy], built once and kept resident across all grid steps.
        q_ref[:m_pad, :] = jnp.sqrt(px)
        q_ref[m_pad:, :] = jnp.sqrt(py)

    off_x = pl.multiple_of(i * tm, 8)
    off_y = pl.multiple_of(m_pad + i * tm, 8)

    qx_blk = q_ref[pl.ds(off_x, tm), :]          # (tm, K) rows of qx
    qy_blk = q_ref[pl.ds(off_y, tm), :]          # (tm, K) rows of qy
    q_all = q_ref[...]                            # (2*m_pad, K)  = [qx; qy]
    qy_all = q_ref[m_pad:, :]                     # (m_pad, K)

    dims = (((1,), (1,)), ((), ()))
    # Only the xx|xy rows and the yy block: the yx quadrant is never computed.
    g_top = lax.dot_general(qx_blk, q_all, dims, preferred_element_type=jnp.float32)
    g_yy = lax.dot_general(qy_blk, qy_all, dims, preferred_element_type=jnp.float32)

    k_top = _diffusion(jnp.clip(g_top, 0.0, 1.0 - eps), t)   # (tm, 2*m_pad)
    k_yy = _diffusion(jnp.clip(g_yy, 0.0, 1.0 - eps), t)     # (tm, m_pad)

    w_xx = 1.0 / (m * (m - 1))
    w_xy = -2.0 / (m * m)

    # Per-element weights via iota masks (VPU selects): xx off-diag gets w_xx,
    # xy gets w_xy, padding rows/cols and the xx diagonal get 0.
    row = lax.broadcasted_iota(jnp.int32, (tm, 2 * m_pad), 0) + i * tm
    col = lax.broadcasted_iota(jnp.int32, (tm, 2 * m_pad), 1)
    in_xx = col < m_pad
    cidx = jnp.where(in_xx, col, col - m_pad)
    w_top = jnp.where(in_xx, w_xx, w_xy).astype(jnp.float32)
    w_top = jnp.where((row < m) & (cidx < m), w_top, 0.0)
    w_top = jnp.where(in_xx & (col == row), 0.0, w_top)       # drop xx diagonal

    row_y = lax.broadcasted_iota(jnp.int32, (tm, m_pad), 0) + i * tm
    col_y = lax.broadcasted_iota(jnp.int32, (tm, m_pad), 1)
    w_y = jnp.where((row_y < m) & (col_y < m) & (col_y != row_y),
                    w_xx, 0.0).astype(jnp.float32)

    partial = (jnp.sum(k_top * w_top, keepdims=True)
               + jnp.sum(k_yy * w_y, keepdims=True))           # (1, 1)
    out_ref[...] += partial


def mmd_pallas(pred_theta, target_theta, *, t, eps):
    m, k = pred_theta.shape
    tm = min(128, _round_up(m, 8))           # sublane-aligned row tile
    m_pad = _round_up(m, tm)
    if m_pad != m:
        pad = ((0, m_pad - m), (0, 0))       # padded rows are masked in-kernel
        pred_theta = jnp.pad(pred_theta, pad)
        target_theta = jnp.pad(target_theta, pad)
    grid = m_pad // tm
    return pl.pallas_call(
        functools.partial(mmd_kernel, t=t, eps=eps, m=m, m_pad=m_pad, tm=tm),
        out_shape=jax.ShapeDtypeStruct((1, 1), jnp.float32),
        grid=(grid,),
        in_specs=[pl.BlockSpec((m_pad, k), lambda i: (0, 0)),   # resident
                  pl.BlockSpec((m_pad, k), lambda i: (0, 0))],  # resident
        out_specs=pl.BlockSpec((1, 1), lambda i: (0, 0)),
        scratch_shapes=[pltpu.VMEM((2 * m_pad, k), jnp.float32)],
        compiler_params=_mosaic_params(),
    )(pred_theta, target_theta)


# ----------------------------------------------------------------------------
# BoW cross entropy (+ mean document length), tiled over the vocabulary axis.
# ----------------------------------------------------------------------------
def cce_kernel(lnpx_ref, x_ref, cce_ref, mlen_ref, acc_c, acc_l, *, inv_m, n_chunks):
    j = pl.program_id(0)

    @pl.when(j == 0)
    def _init():
        acc_c[...] = jnp.zeros_like(acc_c)
        acc_l[...] = jnp.zeros_like(acc_l)

    lnpx = lnpx_ref[...].astype(jnp.float32)     # upcast in-kernel (bf16-friendly)
    x = x_ref[...].astype(jnp.float32)           # x may arrive as int/bf16
    prod = lnpx * x

    # Pure-VPU elementwise accumulation into lane-shaped (M,128) scratch:
    # no per-step cross-lane reduce, no per-step (1,1) masked stores.
    c = acc_c[...]
    l = acc_l[...]
    for nc in range(n_chunks):
        sl = slice(nc * 128, (nc + 1) * 128)     # static, lane-aligned slices
        c = c + prod[:, sl]
        l = l + x[:, sl]
    acc_c[...] = c
    acc_l[...] = l

    @pl.when(j == pl.num_programs(0) - 1)
    def _finalize():
        cce_ref[...] = -jnp.sum(acc_c[...], keepdims=True) * inv_m   # -(lnpx*x).sum(-1).mean()
        mlen_ref[...] = jnp.sum(acc_l[...], keepdims=True) * inv_m   # x.sum(1).mean()


def _choose_vocab_tile(m, v):
    target = (1 << 20) // max(4 * m, 1)          # aim at ~1 MiB per input block
    tv = max(512, min(2048, target))
    tv = max(128, (tv // 128) * 128)             # lane-aligned
    return min(tv, _round_up(v, 128))


def cce_pallas(lnpx, x):
    m, v = x.shape
    tv = _choose_vocab_tile(m, v)
    v_pad = _round_up(v, tv)
    if v_pad != v:
        # Zero padding contributes 0 to both the cce and the length sums.
        pad = ((0, 0), (0, v_pad - v))
        lnpx = jnp.pad(lnpx, pad)
        x = jnp.pad(x, pad)
    grid = v_pad // tv
    scalar = jax.ShapeDtypeStruct((1, 1), jnp.float32)
    # TODO(synk): on v7x, additionally tile the batch axis and mark it
    # "parallel" so both TensorCores participate in this reduction.
    return pl.pallas_call(
        functools.partial(cce_kernel, inv_m=1.0 / m, n_chunks=tv // 128),
        out_shape=(scalar, scalar),
        grid=(grid,),
        in_specs=[pl.BlockSpec((m, tv), lambda j: (0, j)),
                  pl.BlockSpec((m, tv), lambda j: (0, j))],
        out_specs=(pl.BlockSpec((1, 1), lambda j: (0, 0)),
                   pl.BlockSpec((1, 1), lambda j: (0, 0))),
        scratch_shapes=[pltpu.VMEM((m, 128), jnp.float32),
                        pltpu.VMEM((m, 128), jnp.float32)],
        compiler_params=_mosaic_params(),
    )(lnpx, x)


# ----------------------------------------------------------------------------
# Tiled parameter-norm reductions (L1 over encoder params, per-param L2 over
# decoder params).
# ----------------------------------------------------------------------------
def norm_reduce_kernel(p_ref, out_ref, acc_ref, *, mode, n_rows, tr):
    i = pl.program_id(0)

    @pl.when(i == 0)
    def _init():
        acc_ref[...] = jnp.zeros_like(acc_ref)

    p = p_ref[...].astype(jnp.float32)                             # (tr, c)
    row = lax.broadcasted_iota(jnp.int32, p.shape, 0) + i * tr
    p = jnp.where(row < n_rows, p, 0.0)                            # mask ragged tail
    if mode == "l1":
        acc_ref[...] += jnp.abs(p)                                 # elementwise (VPU)
    else:
        acc_ref[...] += p * p

    @pl.when(i == pl.num_programs(0) - 1)
    def _finalize():
        s = jnp.sum(acc_ref[...], keepdims=True)                   # one reduce at the end
        out_ref[...] = jnp.sqrt(s) if mode == "l2" else s


def _as_2d(p):
    if p.ndim == 2:
        return p
    if p.ndim == 1:
        return p.reshape(1, -1)
    return p.reshape(-1, p.shape[-1])


def _choose_row_tile(r, c):
    target = (1 << 20) // max(4 * c, 1)          # rows for ~1 MiB f32 blocks
    tr = max(8, min(1024, (target // 8) * 8))
    return min(tr, _round_up(r, 8))


def _tiled_norm(p2d, mode):
    r, c = p2d.shape
    tr = _choose_row_tile(r, c)
    grid = pl.cdiv(r, tr)
    out = pl.pallas_call(
        functools.partial(norm_reduce_kernel, mode=mode, n_rows=r, tr=tr),
        out_shape=jax.ShapeDtypeStruct((1, 1), jnp.float32),
        grid=(grid,),
        in_specs=[pl.BlockSpec((tr, c), lambda i: (i, 0))],
        out_specs=pl.BlockSpec((1, 1), lambda i: (0, 0)),
        scratch_shapes=[pltpu.VMEM((tr, c), jnp.float32)],
        compiler_params=_mosaic_params(),
    )(p2d)
    return out[0, 0]


_SMALL_PARAM_ELEMS = 16384


def norms_pallas(encoder_params, decoder_params):
    # L1 over encoder params (order irrelevant): tile the big matrices,
    # batch the tiny bias-like params into one flat buffer (one call).
    big = [p for p in encoder_params if p.size > _SMALL_PARAM_ELEMS]
    small = [p for p in encoder_params if p.size <= _SMALL_PARAM_ELEMS]
    l1 = jnp.float32(0.0)
    for p in big:
        l1 = l1 + _tiled_norm(_as_2d(p), "l1")
    if small:
        flat = jnp.concatenate([p.reshape(-1) for p in small]).reshape(1, -1)
        l1 = l1 + _tiled_norm(flat, "l1")
    # Per-parameter L2 norms for the decoder (sqrt applied at kernel finalize).
    l2 = jnp.float32(0.0)
    for p in decoder_params:
        l2 = l2 + _tiled_norm(_as_2d(p), "l2")
    return l1, l2


# ----------------------------------------------------------------------------
# MMDLoss forward (kernel='diffusion', prior_name='dirichlet',
# pred_mode='logsoftmax', theta passed explicitly).
# ----------------------------------------------------------------------------
class MMDLossPallas:
    def __init__(self, t=0.1, eps=1e-6, dirichlet_alpha=0.1,
                 cce_scaling=None, l1_lambda=1e-3, l2_lambda=1e-3):
        self.t = t
        self.eps = eps
        self.dirichlet_alpha = dirichlet_alpha
        self.cce_scaling = cce_scaling
        self.l1_lambda = l1_lambda
        self.l2_lambda = l2_lambda

    def __call__(self, lnpx, x, theta, encoder_params, decoder_params, prior_key):
        # ---- BoW cross entropy + mean doc length (tiled Pallas reduction) ----
        cce_arr, mlen_arr = cce_pallas(lnpx, x)
        cce = cce_arr[0, 0]
        mean_length = mlen_arr[0, 0]

        # ---- prior sample ----
        # TODO(synk): Dirichlet (gamma) sampling has no Pallas equivalent; it
        # stays in jax.random and feeds the tiled MMD kernel below.
        m, k = theta.shape
        alpha = jnp.full((k,), self.dirichlet_alpha, jnp.float32)
        target_theta = jax.random.dirichlet(prior_key, alpha, shape=(m,)).astype(theta.dtype)

        # ---- MMD with information-diffusion kernel (tiled Pallas kernel) ----
        mmd = mmd_pallas(theta, target_theta, t=self.t, eps=self.eps)[0, 0]

        aux = {"nll": cce, "mmd": mmd}

        cce_scaling = self.cce_scaling
        if cce_scaling is None:
            v = x.shape[1]
            cce_scaling = 1.0 / (mean_length * jnp.log(jnp.float32(v)))
        loss = cce * cce_scaling + mmd

        # ---- L1 (encoder) + L2 (decoder) regularisers: tiled reductions ----
        l1_reg, l2_reg = norms_pallas(encoder_params, decoder_params)
        aux["l1norm_reg"] = l1_reg
        aux["l2norm_reg"] = l2_reg
        loss = loss + self.l1_lambda * l1_reg + self.l2_lambda * l2_reg

        aux["loss"] = loss
        return aux


# ----------------------------------------------------------------------------
# Demo
# ----------------------------------------------------------------------------
if __name__ == "__main__":
    M, K, V, H = 8, 16, 8192, 32   # batch, topics, vocab (4 cce grid steps), hidden

    key = jax.random.PRNGKey(0)
    (k_lnpx, k_x, k_theta, k_prior,
     k_p1, k_p2, k_p3, k_p4, k_p5, k_p6) = jax.random.split(key, 10)

    # decoder log-softmax output and BoW target
    lnpx = jax.nn.log_softmax(jax.random.normal(k_lnpx, (M, V), jnp.float32), axis=-1)
    x = jax.random.randint(k_x, (M, V), 0, 6).astype(jnp.float32)
    # topic proportions (rows sum to 1)
    theta = jax.nn.softmax(jax.random.normal(k_theta, (M, K), jnp.float32), axis=-1)

    # deterministic synthetic encoder / decoder parameters for the regularisers
    encoder_params = [
        0.05 * jax.random.normal(k_p1, (V, H), jnp.float32),
        0.05 * jax.random.normal(k_p2, (H,), jnp.float32),
        0.05 * jax.random.normal(k_p3, (H, K), jnp.float32),
        0.05 * jax.random.normal(k_p4, (K,), jnp.float32),
    ]
    decoder_params = [
        0.05 * jax.random.normal(k_p5, (K, V), jnp.float32),
        0.05 * jax.random.normal(k_p6, (V,), jnp.float32),
    ]

    loss_fn = MMDLossPallas(t=0.1, eps=1e-6, dirichlet_alpha=0.1,
                            cce_scaling=None, l1_lambda=1e-3, l2_lambda=1e-3)
    aux = loss_fn(lnpx, x, theta, encoder_params, decoder_params, k_prior)
    aux = jax.tree_util.tree_map(jax.block_until_ready, aux)

    assert all(bool(jnp.isfinite(v)) for v in aux.values()), "non-finite output"
    print("KERNEL_OK")
</pallas_src>

<mosaic_0001>
module attributes {stable_mosaic.version = 11 : i64} {
  func.func @cce_kernel(%arg0: i32, %arg1: memref<8x2048xf32, #tpu.memory_space<vmem>>, %arg2: memref<8x2048xf32, #tpu.memory_space<vmem>>, %arg3: memref<1x1xf32, #tpu.memory_space<vmem>>, %arg4: memref<1x1xf32, #tpu.memory_space<vmem>>, %arg5: memref<8x128xf32, #tpu.memory_space<vmem>>, %arg6: memref<8x128xf32, #tpu.memory_space<vmem>>) attributes {dimension_semantics = [#tpu.dimension_semantics<arbitrary>], iteration_bounds = array<i64: 4>, scalar_prefetch = 0 : i64, scratch_operands = 2 : i64, tpu.core_type = #tpu.core_type<tc>, window_params = [{transform_indices = @transform_0, window_bounds = array<i64: 8, 2048>}, {transform_indices = @transform_1, window_bounds = array<i64: 8, 2048>}, {pipeline_mode = #tpu.pipeline_mode<synchronous>, transform_indices = @transform_2, window_bounds = array<i64: 1, 1>}, {pipeline_mode = #tpu.pipeline_mode<synchronous>, transform_indices = @transform_3, window_bounds = array<i64: 1, 1>}]} {
    %c0_i32 = arith.constant 0 : i32
    %0 = arith.cmpi eq, %arg0, %c0_i32 : i32
    %1 = arith.extui %0 : i1 to i32
    %c0_i32_0 = arith.constant 0 : i32
    %2 = arith.cmpi ne, %1, %c0_i32_0 : i32
    scf.if %2 {
      %cst = arith.constant 0.000000e+00 : f32
      %77 = vector.broadcast %cst : f32 to vector<8x128xf32>
      %c0_13 = arith.constant 0 : index
      %c0_14 = arith.constant 0 : index
      %78 = vector.load %arg5[%c0_13, %c0_14] : memref<8x128xf32, #tpu.memory_space<vmem>>, vector<8x128xf32>
      tpu.vector_store %arg5[%c0_13, %c0_14], %77 {strides = array<i32>} : memref<8x128xf32, #tpu.memory_space<vmem>>, vector<8x128xf32>,
      %cst_15 = arith.constant 0.000000e+00 : f32
      %79 = vector.broadcast %cst_15 : f32 to vector<8x128xf32>
      %c0_16 = arith.constant 0 : index
      %c0_17 = arith.constant 0 : index
      %80 = vector.load %arg6[%c0_16, %c0_17] : memref<8x128xf32, #tpu.memory_space<vmem>>, vector<8x128xf32>
      tpu.vector_store %arg6[%c0_16, %c0_17], %79 {strides = array<i32>} : memref<8x128xf32, #tpu.memory_space<vmem>>, vector<8x128xf32>,
    } else {
    }
    %c0 = arith.constant 0 : index
    %c0_1 = arith.constant 0 : index
    %3 = vector.load %arg1[%c0, %c0_1] : memref<8x2048xf32, #tpu.memory_space<vmem>>, vector<8x2048xf32>
    %c0_2 = arith.constant 0 : index
    %c0_3 = arith.constant 0 : index
    %4 = vector.load %arg2[%c0_2, %c0_3] : memref<8x2048xf32, #tpu.memory_space<vmem>>, vector<8x2048xf32>
    %5 = arith.mulf %3, %4 : vector<8x2048xf32>
    %c0_4 = arith.constant 0 : index
    %c0_5 = arith.constant 0 : index
    %6 = vector.load %arg5[%c0_4, %c0_5] : memref<8x128xf32, #tpu.memory_space<vmem>>, vector<8x128xf32>
    %c0_6 = arith.constant 0 : index
    %c0_7 = arith.constant 0 : index
    %7 = vector.load %arg6[%c0_6, %c0_7] : memref<8x128xf32, #tpu.memory_space<vmem>>, vector<8x128xf32>
    %8 = vector.extract_strided_slice %5 {offsets = [0, 0], sizes = [8, 128], strides = [1, 1]} : vector<8x2048xf32> to vector<8x128xf32>
    %9 = arith.addf %6, %8 : vector<8x128xf32>
    %10 = vector.extract_strided_slice %4 {offsets = [0, 0], sizes = [8, 128], strides = [1, 1]} : vector<8x2048xf32> to vector<8x128xf32>
    %11 = arith.addf %7, %10 : vector<8x128xf32>
    %12 = vector.extract_strided_slice %5 {offsets = [0, 128], sizes = [8, 128], strides = [1, 1]} : vector<8x2048xf32> to vector<8x128xf32>
    %13 = arith.addf %9, %12 : vector<8x128xf32>
    %14 = vector.extract_strided_slice %4 {offsets = [0, 128], sizes = [8, 128], strides = [1, 1]} : vector<8x2048xf32> to vector<8x128xf32>
    %15 = arith.addf %11, %14 : vector<8x128xf32>
    %16 = vector.extract_strided_slice %5 {offsets = [0, 256], sizes = [8, 128], strides = [1, 1]} : vector<8x2048xf32> to vector<8x128xf32>
    %17 = arith.addf %13, %16 : vector<8x128xf32>
    %18 = vector.extract_strided_slice %4 {offsets = [0, 256], sizes = [8, 128], strides = [1, 1]} : vector<8x2048xf32> to vector<8x128xf32>
    %19 = arith.addf %15, %18 : vector<8x128xf32>
    %20 = vector.extract_strided_slice %5 {offsets = [0, 384], sizes = [8, 128], strides = [1, 1]} : vector<8x2048xf32> to vector<8x128xf32>
    %21 = arith.addf %17, %20 : vector<8x128xf32>
    %22 = vector.extract_strided_slice %4 {offsets = [0, 384], sizes = [8, 128], strides = [1, 1]} : vector<8x2048xf32> to vector<8x128xf32>
    %23 = arith.addf %19, %22 : vector<8x128xf32>
    %24 = vector.extract_strided_slice %5 {offsets = [0, 512], sizes = [8, 128], strides = [1, 1]} : vector<8x2048xf32> to vector<8x128xf32>
    %25 = arith.addf %21, %24 : vector<8x128xf32>
    %26 = vector.extract_strided_slice %4 {offsets = [0, 512], sizes = [8, 128], strides = [1, 1]} : vector<8x2048xf32> to vector<8x128xf32>
    %27 = arith.addf %23, %26 : vector<8x128xf32>
    %28 = vector.extract_strided_slice %5 {offsets = [0, 640], sizes = [8, 128], strides = [1, 1]} : vector<8x2048xf32> to vector<8x128xf32>
    %29 = arith.addf %25, %28 : vector<8x128xf32>
    %30 = vector.extract_strided_slice %4 {offsets = [0, 640], sizes = [8, 128], strides = [1, 1]} : vector<8x2048xf32> to vector<8x128xf32>
    %31 = arith.addf %27, %30 : vector<8x128xf32>
    %32 = vector.extract_strided_slice %5 {offsets = [0, 768], sizes = [8, 128], strides = [1, 1]} : vector<8x2048xf32> to vector<8x128xf32>
    %33 = arith.addf %29, %32 : vector<8x128xf32>
    %34 = vector.extract_strided_slice %4 {offsets = [0, 768], sizes = [8, 128], strides = [1, 1]} : vector<8x2048xf32> to vector<8x128xf32>
    %35 = arith.addf %31, %34 : vector<8x128xf32>
    %36 = vector.extract_strided_slice %5 {offsets = [0, 896], sizes = [8, 128], strides = [1, 1]} : vector<8x2048xf32> to vector<8x128xf32>
    %37 = arith.addf %33, %36 : vector<8x128xf32>
    %38 = vector.extract_strided_slice %4 {offsets = [0, 896], sizes = [8, 128], strides = [1, 1]} : vector<8x2048xf32> to vector<8x128xf32>
    %39 = arith.addf %35, %38 : vector<8x128xf32>
    %40 = vector.extract_strided_slice %5 {offsets = [0, 1024], sizes = [8, 128], strides = [1, 1]} : vector<8x2048xf32> to vector<8x128xf32>
    %41 = arith.addf %37, %40 : vector<8x128xf32>
    %42 = vector.extract_strided_slice %4 {offsets = [0, 1024], sizes = [8, 128], strides = [1, 1]} : vector<8x2048xf32> to vector<8x128xf32>
    %43 = arith.addf %39, %42 : vector<8x128xf32>
    %44 = vector.extract_strided_slice %5 {offsets = [0, 1152], sizes = [8, 128], strides = [1, 1]} : vector<8x2048xf32> to vector<8x128xf32>
    %45 = arith.addf %41, %44 : vector<8x128xf32>
    %46 = vector.extract_strided_slice %4 {offsets = [0, 1152], sizes = [8, 128], strides = [1, 1]} : vector<8x2048xf32> to vector<8x128xf32>
    %47 = arith.addf %43, %46 : vector<8x128xf32>
    %48 = vector.extract_strided_slice %5 {offsets = [0, 1280], sizes = [8, 128], strides = [1, 1]} : vector<8x2048xf32> to vector<8x128xf32>
    %49 = arith.addf %45, %48 : vector<8x128xf32>
    %50 = vector.extract_strided_slice %4 {offsets = [0, 1280], sizes = [8, 128], strides = [1, 1]} : vector<8x2048xf32> to vector<8x128xf32>
    %51 = arith.addf %47, %50 : vector<8x128xf32>
    %52 = vector.extract_strided_slice %5 {offsets = [0, 1408], sizes = [8, 128], strides = [1, 1]} : vector<8x2048xf32> to vector<8x128xf32>
    %53 = arith.addf %49, %52 : vector<8x128xf32>
    %54 = vector.extract_strided_slice %4 {offsets = [0, 1408], sizes = [8, 128], strides = [1, 1]} : vector<8x2048xf32> to vector<8x128xf32>
    %55 = arith.addf %51, %54 : vector<8x128xf32>
    %56 = vector.extract_strided_slice %5 {offsets = [0, 1536], sizes = [8, 128], strides = [1, 1]} : vector<8x2048xf32> to vector<8x128xf32>
    %57 = arith.addf %53, %56 : vector<8x128xf32>
    %58 = vector.extract_strided_slice %4 {offsets = [0, 1536], sizes = [8, 128], strides = [1, 1]} : vector<8x2048xf32> to vector<8x128xf32>
    %59 = arith.addf %55, %58 : vector<8x128xf32>
    %60 = vector.extract_strided_slice %5 {offsets = [0, 1664], sizes = [8, 128], strides = [1, 1]} : vector<8x2048xf32> to vector<8x128xf32>
    %61 = arith.addf %57, %60 : vector<8x128xf32>
    %62 = vector.extract_strided_slice %4 {offsets = [0, 1664], sizes = [8, 128], strides = [1, 1]} : vector<8x2048xf32> to vector<8x128xf32>
    %63 = arith.addf %59, %62 : vector<8x128xf32>
    %64 = vector.extract_strided_slice %5 {offsets = [0, 1792], sizes = [8, 128], strides = [1, 1]} : vector<8x2048xf32> to vector<8x128xf32>
    %65 = arith.addf %61, %64 : vector<8x128xf32>
    %66 = vector.extract_strided_slice %4 {offsets = [0, 1792], sizes = [8, 128], strides = [1, 1]} : vector<8x2048xf32> to vector<8x128xf32>
    %67 = arith.addf %63, %66 : vector<8x128xf32>
    %68 = vector.extract_strided_slice %5 {offsets = [0, 1920], sizes = [8, 128], strides = [1, 1]} : vector<8x2048xf32> to vector<8x128xf32>
    %69 = arith.addf %65, %68 : vector<8x128xf32>
    %70 = vector.extract_strided_slice %4 {offsets = [0, 1920], sizes = [8, 128], strides = [1, 1]} : vector<8x2048xf32> to vector<8x128xf32>
    %71 = arith.addf %67, %70 : vector<8x128xf32>
    %c0_8 = arith.constant 0 : index
    %c0_9 = arith.constant 0 : index
    %72 = vector.load %arg5[%c0_8, %c0_9] : memref<8x128xf32, #tpu.memory_space<vmem>>, vector<8x128xf32>
    tpu.vector_store %arg5[%c0_8, %c0_9], %69 {strides = array<i32>} : memref<8x128xf32, #tpu.memory_space<vmem>>, vector<8x128xf32>,
    %c0_10 = arith.constant 0 : index
    %c0_11 = arith.constant 0 : index
    %73 = vector.load %arg6[%c0_10, %c0_11] : memref<8x128xf32, #tpu.memory_space<vmem>>, vector<8x128xf32>
    tpu.vector_store %arg6[%c0_10, %c0_11], %71 {strides = array<i32>} : memref<8x128xf32, #tpu.memory_space<vmem>>, vector<8x128xf32>,
    %c3_i32 = arith.constant 3 : i32
    %74 = arith.cmpi eq, %arg0, %c3_i32 : i32
    %75 = arith.extui %74 : i1 to i32
    %c0_i32_12 = arith.constant 0 : i32
    %76 = arith.cmpi ne, %75, %c0_i32_12 : i32
    scf.if %76 {
      %c0_13 = arith.constant 0 : index
      %c0_14 = arith.constant 0 : index
      %77 = vector.load %arg5[%c0_13, %c0_14] : memref<8x128xf32, #tpu.memory_space<vmem>>, vector<8x128xf32>
      %78 = vector.shape_cast %77 : vector<8x128xf32> to vector<1x8x128xf32>
      %cst = arith.constant dense<0.000000e+00> : vector<1xf32>
      %79 = vector.multi_reduction <add>, %78, %cst [1, 2] : vector<1x8x128xf32> to vector<1xf32>
      %80 = vector.shape_cast %79 : vector<1xf32> to vector<1x1x1xf32>
      %81 = vector.extract %80[0, 0, 0] : f32 from vector<1x1x1xf32>
      %82 = vector.broadcast %81 : f32 to vector<1x1xf32>
      %cst_15 = arith.constant 0.000000e+00 : f32
      %83 = vector.broadcast %cst_15 : f32 to vector<1x1xf32>
      %84 = arith.subf %83, %82 : vector<1x1xf32>
      %cst_16 = arith.constant 1.250000e-01 : f32
      %85 = vector.broadcast %cst_16 : f32 to vector<1x1xf32>
      %86 = arith.mulf %84, %85 : vector<1x1xf32>
      %c0_17 = arith.constant 0 : index
      %c0_18 = arith.constant 0 : index
      %87 = vector.load %arg3[%c0_17, %c0_18] : memref<1x1xf32, #tpu.memory_space<vmem>>, vector<1x1xf32>
      tpu.vector_store %arg3[%c0_17, %c0_18], %86 {strides = array<i32>} : memref<1x1xf32, #tpu.memory_space<vmem>>, vector<1x1xf32>,
      %c0_19 = arith.constant 0 : index
      %c0_20 = arith.constant 0 : index
      %88 = vector.load %arg6[%c0_19, %c0_20] : memref<8x128xf32, #tpu.memory_space<vmem>>, vector<8x128xf32>
      %89 = vector.shape_cast %88 : vector<8x128xf32> to vector<1x8x128xf32>
      %cst_21 = arith.constant dense<0.000000e+00> : vector<1xf32>
      %90 = vector.multi_reduction <add>, %89, %cst_21 [1, 2] : vector<1x8x128xf32> to vector<1xf32>
      %91 = vector.shape_cast %90 : vector<1xf32> to vector<1x1x1xf32>
      %92 = vector.extract %91[0, 0, 0] : f32 from vector<1x1x1xf32>
      %93 = vector.broadcast %92 : f32 to vector<1x1xf32>
      %cst_22 = arith.constant 1.250000e-01 : f32
      %94 = vector.broadcast %cst_22 : f32 to vector<1x1xf32>
      %95 = arith.mulf %93, %94 : vector<1x1xf32>
      %c0_23 = arith.constant 0 : index
      %c0_24 = arith.constant 0 : index
      %96 = vector.load %arg4[%c0_23, %c0_24] : memref<1x1xf32, #tpu.memory_space<vmem>>, vector<1x1xf32>
      tpu.vector_store %arg4[%c0_23, %c0_24], %95 {strides = array<i32>} : memref<1x1xf32, #tpu.memory_space<vmem>>, vector<1x1xf32>,
    } else {
    }
    return
  }
  func.func @transform_0(%arg0: i32) -> (i32, i32) {
    %c0_i32 = arith.constant 0 : i32
    %c0_i32_0 = arith.constant 0 : i32
    return %c0_i32, %arg0 : i32, i32
  }
  func.func @transform_1(%arg0: i32) -> (i32, i32) {
    %c0_i32 = arith.constant 0 : i32
    %c0_i32_0 = arith.constant 0 : i32
    return %c0_i32, %arg0 : i32, i32
  }
  func.func @transform_2(%arg0: i32) -> (i32, i32) {
    %c0_i32 = arith.constant 0 : i32
    %c0_i32_0 = arith.constant 0 : i32
    %c0_i32_1 = arith.constant 0 : i32
    return %c0_i32, %c0_i32_0 : i32, i32
  }
  func.func @transform_3(%arg0: i32) -> (i32, i32) {
    %c0_i32 = arith.constant 0 : i32
    %c0_i32_0 = arith.constant 0 : i32
    %c0_i32_1 = arith.constant 0 : i32
    return %c0_i32, %c0_i32_0 : i32, i32
  }
}

</mosaic_0001>

<bundles_post_ra>
// kernel: tpu_custom_call.1
= control target key start
LH: loop header
LB: loop body
LE: loop exit
PB: predicated region body
PF: predicated region fallthrough
CT: control target
= control target key end

     0   :  { %9 = vsyncpa [#allocation5], 0  ;;  %s896_s0 = inlined_call_operand.hbm [shape: f32[8,8192], index: 0, kind: input, shape index: {}]   ;;  %s897_s1 = inlined_call_operand.hbm [shape: f32[8,8192], index: 1, kind: input, shape index: {}]   ;;  %s898_s2 = inlined_call_operand.hbm [shape: f32[1,1], index: 2, kind: output, shape index: {0}]   ;;  %s899_s3 = inlined_call_operand.hbm [shape: f32[1,1], index: 3, kind: output, shape index: {1}]  }
   0x1   :  { %11 = vsyncpa [#allocation5 + $0x1], 0 }
   0x2   :  { %12 = vsyncpa [#allocation8], 0 }
   0x3   :  { %14 = vsyncpa [#allocation8 + $0x1], 0 }
   0x4   :  { %15 = vsyncpa [#allocation6], 0 }
   0x5   :  { %16 = vsyncpa [#allocation11], 0  ;;  %s718_s12 = smov 0   ;;  %s720_s13 = smov 0  }
   0x6   :  { %s722_s14 = smov 0   ;;  %s724_s15 = smov 0  }
   0x7 LB: > { %s737_s16 = sadd.s32 4294967295, %s693_s15   ;;  %s740_s17 = sadd.s32 1, %s693_s15   ;;  %s693_s15 = sphi %s724_s15, %s907_s15   ;;  %s689_s14 = sphi %s722_s14, %s906_s14   ;;  %s685_s13 = sphi %s720_s13, %s905_s13   ;;  %s681_s12 = sphi %s718_s12, %s904_s12  }
   0x8   : > { %s26_s18 = ssub.s32 %s693_s15, %s740_s17  ;;  %s29_s19 = sadd.s32 1, %s689_s14 }
   0x9   : > { %p27_p0 = scmp.eq.s32.totalorder %s26_s18, 0  ;;  %p36_p1 = scmp.ne.s32.totalorder %s689_s14, %s685_s13 }
   0xa   : > { %p37_p2 = scmp.eq.s32.totalorder %s693_s15, 0  ;;  %p42_p3 = scmp.ne.s32.totalorder %s685_s13, %s681_s12 }
   0xb   : > { %s750_s20 = scalar_select %p27_p0, %s689_s14, %s29_s19  }
   0xc   : > { %p752_p4 = por %p37_p2, %p36_p1  ;;  %p43_p5 = scmp.eq.s32.totalorder %s737_s16, 0 }
   0xd   : > { %p491_p6 = scmp.lt.s32.totalorder %s693_s15, 4  ;;  %s763_s23 = sand.u32 1, %s689_s14  }
   0xe   : > { %p758_p7 = por %p43_p5, %p42_p3  ;;  %s449_s24 = sshll.u32 %s763_s23, 7 }
   0xf   : > { %s466_s25 = sshll.u32 %s693_s15, 7  ;;  %s138_s29 = scalar_lea.vmem [#allocation4], %s449_s24 }
  0x10   : > { %s143_s28 = scalar_lea.hbm %s896_s0, %s466_s25  ;;  %s147_s30 = sshll.u32 %s138_s29, 4  ;;  %s148_s30 = int_to_ptr.vmem [resolvable:$true] %s147_s30 }
  0x11   : > { %s145_s4 = sshll.u32 %s143_s28, 4  ;;  %p772_p8 = pnand %p491_p6, %p752_p4  ;;  %s146_s4 = int_to_ptr.hbm [resolvable:$true] %s145_s4 }
  0x12   : > { %p455_p9 = scmp.ge.s32.totalorder %s693_s15, 1  ;;  %p172_p10 = scmp.lt.s32.totalorder %s693_s15, 5 }
  0x13   : > { %s135_s6 = scalar_lea.sflag [#allocation5], %s763_s23  ;;  %s531_s7 = sshra.s32 %s146_s4, 4  ;;  %s532_s7 = int_to_ptr.hbm [resolvable:$true] %s531_s7 }
  0x14   : > { %s533_s8 = scalar_lea.hbm %s532_s7, 128  ;;  %p535_p12 = pneg %p772_p8 }
  0x15   : > { %p534_p11 = scmp.ne.s32.totalorder %s532_s7, %s533_s8  ;;  %s538_s11 = scalar_lea.hbm %s896_s0, 512 }
  0x16   : > { %p539_p1 = scmp.lt.s32.totalorder %s532_s7, %s896_s0  ;;  %p540_p2 = scmp.lt.s32.totalorder %s538_s11, %s533_s8 }
  0x17   : > { %p536_p13 = pnand %p535_p12, %p534_p11 }
  0x18   : > { %p541_p3 = por %p540_p2, %p539_p1 }
  0x19   : > { %p537_p0 = pneg %p536_p13 }
  0x1b   : > { %p542_p4 = pnand %p541_p3, %p537_p0 }
  0x1d   : > { %545 = shalt.err (!%p542_p4)
}
  0x1e   : > { %487 = dma.hbm_to_vmem [thread:$0]  (!%p772_p8), %s146_s4, 2048, %s148_s30, %s135_s6  }
  0x1f   : > { %p796_p5 = pnand %p455_p9, %p172_p10  ;;  %s163_s27 = scalar_lea.hbm %s897_s1, %s466_s25 }
  0x20   : > { %s158_s28 = scalar_lea.vmem [#allocation7], %s449_s24  ;;  %s165_s7 = sshll.u32 %s163_s27, 4  ;;  %s166_s7 = int_to_ptr.hbm [resolvable:$true] %s165_s7 }
  0x21   : > { %s167_s29 = sshll.u32 %s158_s28, 4  ;;  %s155_s8 = scalar_lea.sflag [#allocation8], %s763_s23  ;;  %s168_s29 = int_to_ptr.vmem [resolvable:$true] %s167_s29 }
  0x22   : > { %s561_s9 = sshra.s32 %s166_s7, 4  ;;  %s568_s4 = scalar_lea.hbm %s897_s1, 512  ;;  %s562_s9 = int_to_ptr.hbm [resolvable:$true] %s561_s9 }
  0x23   : > { %s563_s10 = scalar_lea.hbm %s562_s9, 128  ;;  %p569_p11 = scmp.lt.s32.totalorder %s562_s9, %s897_s1 }
  0x24   : > { %p564_p6 = scmp.ne.s32.totalorder %s562_s9, %s563_s10  ;;  %p570_p13 = scmp.lt.s32.totalorder %s568_s4, %s563_s10 }
  0x26   : > { %p566_p9 = pnand %p564_p6, %p535_p12  ;;  %p571_p0 = por %p570_p13, %p569_p11 }
  0x28   : > { %p567_p10 = pneg %p566_p9 }
  0x2a   : > { %p572_p1 = pnand %p571_p0, %p567_p10 }
  0x2c   : > { %575 = shalt.err (!%p572_p1)
}
  0x2d   : > { %490 = dma.hbm_to_vmem [thread:$0]  (!%p772_p8), %s166_s7, 2048, %s168_s29, %s155_s8  }
  0x2e   : > { %176 = sbr.rel (%p796_p5) target bundleno = 310 (0x136), region = 28  ;;  %s178_s23 = sand.u32 (!%p796_p5), 1, %s685_s13  }
  0x2f   : > { %s456_s24 = sshll.u32 (!%p796_p5), %s178_s23, 7  ;;  %s179_s11 = scalar_lea.sflag (!%p796_p5), [#allocation5], %s178_s23 }
  0x30   : > { %s818_s12 = scalar_lea.vmem (!%p796_p5), [#allocation4], %s456_s24 }
  0x33   : > { %664 = dma.done.wait (%p758_p7), %s179_s11, 2048  }
  0x34   : > { %666 = vsyncadd (%p758_p7), %s179_s11, 4294965248  ;;  %s189_s18 = scalar_lea.sflag [#allocation8], %s178_s23  ;;  %s824_s21 = scalar_lea.vmem [#allocation7], %s456_s24 }
  0x35   : > { %668 = dma.done.wait (%p758_p7), %s189_s18, 2048  }
  0x36   : > { %670 = vsyncadd (%p758_p7), %s189_s18, 4294965248  ;;  %p458_p8 = scmp.ne.s32.totalorder %s737_s16, 0 }
  0x38   : > { %221 = sbr.rel (%p458_p8) target bundleno = 64 (0x40), region = 40 }
  0x3d   : > { %v695_v0 = vmov 0.0  }
  0x3e   : > { %222 = vst [vmem:[#allocation2] sm:$0xff] %v695_v0 }
  0x3f   : > { %223 = vst [vmem:[#allocation3] sm:$0xff] %v695_v0 }
  0x40 PF: > { %v224_v1 = vld [vmem:[%s818_s12] sm:$0xff]  ;;  %v225_v3 = vld [vmem:[%s818_s12 + $0x8] sm:$0xff]  ;;  %v226_v6 = vld [vmem:[%s818_s12 + $0x10] sm:$0xff]  ;;  %p459_p7 = scmp.ne.s32.totalorder %s737_s16, 3 }
  0x41   : > { %v240_v2 = vld [vmem:[%s824_s21] sm:$0xff]  ;;  %v241_v4 = vld [vmem:[%s824_s21 + $0x8] sm:$0xff]  ;;  %v242_v7 = vld [vmem:[%s824_s21 + $0x10] sm:$0xff] }
  0x42   : > { %v256_v5 = vmul.f32 %v240_v2, %v224_v1  ;;  %v257_v8 = vmul.f32 %v241_v4, %v225_v3  ;;  %v227_v9 = vld [vmem:[%s818_s12 + $0x18] sm:$0xff]  ;;  %v258_v12 = vmul.f32 %v242_v7, %v226_v6  ;;  %v228_v15 = vld [vmem:[%s818_s12 + $0x20] sm:$0xff]  ;;  %v229_v20 = vld [vmem:[%s818_s12 + $0x28] sm:$0xff] }
  0x43   : > { %v243_v10 = vld [vmem:[%s824_s21 + $0x18] sm:$0xff]  ;;  %v244_v16 = vld [vmem:[%s824_s21 + $0x20] sm:$0xff]  ;;  %v245_v21 = vld [vmem:[%s824_s21 + $0x28] sm:$0xff] }
  0x44   : > { %v259_v18 = vmul.f32 %v243_v10, %v227_v9  ;;  %v260_v23 = vmul.f32 %v244_v16, %v228_v15  ;;  %v230_v25 = vld [vmem:[%s818_s12 + $0x30] sm:$0xff]  ;;  %v261_v28 = vmul.f32 %v245_v21, %v229_v20  ;;  %v231_v30 = vld [vmem:[%s818_s12 + $0x38] sm:$0xff]  ;;  %v232_v35 = vld [vmem:[%s818_s12 + $0x40] sm:$0xff] }
  0x45   : > { %v272_v11 = vld [vmem:[#allocation2] sm:$0xff]  ;;  %v247_v31 = vld [vmem:[%s824_s21 + $0x38] sm:$0xff]  ;;  %v248_v36 = vld [vmem:[%s824_s21 + $0x40] sm:$0xff] }
  0x46   : > { %v274_v13 = vadd.f32 %v272_v11, %v256_v5  ;;  %v273_v14 = vld [vmem:[#allocation3] sm:$0xff]  ;;  %v246_v26 = vld [vmem:[%s824_s21 + $0x30] sm:$0xff]  ;;  %v263_v38 = vmul.f32 %v247_v31, %v231_v30  ;;  %v233_v40 = vld [vmem:[%s818_s12 + $0x48] sm:$0xff]  ;;  %v264_v43 = vmul.f32 %v248_v36, %v232_v35 }
  0x47   : > { %v275_v17 = vadd.f32 %v273_v14, %v240_v2  ;;  %v262_v33 = vmul.f32 %v246_v26, %v230_v25  ;;  %v249_v41 = vld [vmem:[%s824_s21 + $0x48] sm:$0xff]  ;;  %v234_v45 = vld [vmem:[%s818_s12 + $0x50] sm:$0xff]  ;;  %v235_v50 = vld [vmem:[%s818_s12 + $0x58] sm:$0xff] }
  0x48   : > { %v276_v19 = vadd.f32 %v274_v13, %v257_v8  ;;  %v250_v46 = vld [vmem:[%s824_s21 + $0x50] sm:$0xff]  ;;  %v265_v48 = vmul.f32 %v249_v41, %v233_v40  ;;  %v251_v51 = vld [vmem:[%s824_s21 + $0x58] sm:$0xff]  ;;  %v236_v55 = vld [vmem:[%s818_s12 + $0x60] sm:$0xff] }
  0x49   : > { %v277_v22 = vadd.f32 %v275_v17, %v241_v4  ;;  %v266_v53 = vmul.f32 %v250_v46, %v234_v45  ;;  %v252_v56 = vld [vmem:[%s824_s21 + $0x60] sm:$0xff]  ;;  %v267_v58 = vmul.f32 %v251_v51, %v235_v50  ;;  %v237_v60 = vld [vmem:[%s818_s12 + $0x68] sm:$0xff]  ;;  %v238_v1 = vld [vmem:[%s818_s12 + $0x70] sm:$0xff] }
  0x4a   : > { %v278_v24 = vadd.f32 %v276_v19, %v258_v12  ;;  %v253_v61 = vld [vmem:[%s824_s21 + $0x68] sm:$0xff]  ;;  %v268_v63 = vmul.f32 %v252_v56, %v236_v55  ;;  %v254_v2 = vld [vmem:[%s824_s21 + $0x70] sm:$0xff]  ;;  %v239_v6 = vld [vmem:[%s818_s12 + $0x78] sm:$0xff] }
  0x4b   : > { %v279_v27 = vadd.f32 %v277_v22, %v242_v7  ;;  %v269_v4 = vmul.f32 %v253_v61, %v237_v60  ;;  %v255_v7 = vld [vmem:[%s824_s21 + $0x78] sm:$0xff]  ;;  %v270_v9 = vmul.f32 %v254_v2, %v238_v1 }
  0x4c   : > { %v280_v29 = vadd.f32 %v278_v24, %v259_v18  ;;  %v271_v12 = vmul.f32 %v255_v7, %v239_v6 }
  0x4d   : > { %v281_v32 = vadd.f32 %v279_v27, %v243_v10 }
  0x4e   : > { %v282_v34 = vadd.f32 %v280_v29, %v260_v23 }
  0x4f   : > { %v283_v37 = vadd.f32 %v281_v32, %v244_v16 }
  0x50   : > { %v284_v39 = vadd.f32 %v282_v34, %v261_v28 }
  0x51   : > { %v285_v42 = vadd.f32 %v283_v37, %v245_v21 }
  0x52   : > { %v286_v44 = vadd.f32 %v284_v39, %v262_v33 }
  0x53   : > { %v287_v47 = vadd.f32 %v285_v42, %v246_v26 }
  0x54   : > { %v288_v49 = vadd.f32 %v286_v44, %v263_v38 }
  0x55   : > { %v289_v52 = vadd.f32 %v287_v47, %v247_v31 }
  0x56   : > { %v290_v54 = vadd.f32 %v288_v49, %v264_v43 }
  0x57   : > { %v291_v57 = vadd.f32 %v289_v52, %v248_v36 }
  0x58   : > { %v292_v59 = vadd.f32 %v290_v54, %v265_v48 }
  0x59   : > { %v293_v62 = vadd.f32 %v291_v57, %v249_v41 }
  0x5a   : > { %v294_v0 = vadd.f32 %v292_v59, %v266_v53 }
  0x5b   : > { %v295_v3 = vadd.f32 %v293_v62, %v250_v46 }
  0x5c   : > { %v296_v5 = vadd.f32 %v294_v0, %v267_v58 }
  0x5d   : > { %v297_v8 = vadd.f32 %v295_v3, %v251_v51 }
  0x5e   : > { %v298_v10 = vadd.f32 %v296_v5, %v268_v63 }
  0x5f   : > { %v299_v11 = vadd.f32 %v297_v8, %v252_v56 }
  0x60   : > { %v300_v13 = vadd.f32 %v298_v10, %v269_v4 }
  0x61   : > { %v301_v14 = vadd.f32 %v299_v11, %v253_v61 }
  0x62   : > { %v302_v15 = vadd.f32 %v300_v13, %v270_v9 }
  0x63   : > { %v303_v16 = vadd.f32 %v301_v14, %v254_v2  ;;  %311 = sbr.rel (%p459_p7) target bundleno = 300 (0x12c), region = 44 }
  0x64   : > { %v304_v17 = vadd.f32 %v302_v15, %v271_v12 }
  0x65   : > { %v305_v18 = vadd.f32 %v303_v16, %v255_v7 }
  0x66   : > { %306 = vst [vmem:[#allocation2] sm:$0xff] %v304_v17 }
  0x67   : > { %307 = vst [vmem:[#allocation3] sm:$0xff] %v305_v18 }
  0x68   : > { %vm325_vm0 = vcmask 0  }
  0x6d   : > { %v312_v19 = vld [vmem:[#allocation2] sm:$0xff] }
  0x6e   : > { %313 = vadd.xlane.f32.xlu0 %v312_v19  ;;  %v327_v20 = vld [vmem:[#allocation3] sm:$0xff] }
  0x76   : > { %328 = vadd.xlane.f32.xlu0 %v327_v20 }
  0xe1   : > { %v314_v21 = vpop.xlane.xlu0 %313 }
  0xe2   : > { %v315_v22 = vrot.slane %v314_v21, 4 }
  0xe4   : > { %v316_v23 = vadd.f32 %v315_v22, %v314_v21 }
  0xe6   : > { %v317_v24 = vrot.slane %v316_v23, 2 }
  0xe8   : > { %v318_v25 = vadd.f32 %v317_v24, %v316_v23 }
  0xe9   : > { %v329_v26 = vpop.xlane.xlu0 %328 }
  0xea   : > { %v330_v27 = vrot.slane %v329_v26, 4  ;;  %v319_v28 = vrot.slane %v318_v25, 1 }
  0xec   : > { %v331_v29 = vadd.f32 %v330_v27, %v329_v26  ;;  %v320_v30 = vadd.f32 %v319_v28, %v318_v25 }
  0xee   : > { %v332_v31 = vrot.slane %v331_v29, 2  ;;  %468 = vpush %v320_v30 }
  0xf0   : > { %v333_v32 = vadd.f32 %v332_v31, %v331_v29 }
  0xf2   : > { %v334_v33 = vrot.slane %v333_v32, 1 }
  0xf4   : > { %v335_v34 = vadd.f32 %v334_v33, %v333_v32 }
  0xf6   : > { %470 = vpush %v335_v34 }
 0x11f   : > { %s469_s22 = spop %468 }
 0x120   : > { %v322_v35 = vstv %s469_s22 }
 0x121   : > { %v323_v36 = vsub.f32 0.0, %v322_v35 }
 0x123   : > { %v324_v37 = vmul.f32 0.125, %v323_v36 }
 0x125   : > { %326 = vst.msk [vmem:[#allocation9] sm:$0x1] %vm325_vm0, %v324_v37 }
 0x127   : > { %s471_s5 = spop %470 }
 0x128   : > { %v337_v38 = vstv %s471_s5 }
 0x129   : > { %v338_v39 = vmul.f32 0.125, %v337_v38 }
 0x12b   : > { %339 = vst.msk [vmem:[#allocation10] sm:$0x1] %vm325_vm0, %v338_v39 }
 0x12c PF: > { %p492_p12 = scmp.eq.s32.totalorder %s737_s16, 3  ;;  %s696_s19 = smov [#allocation9]  }
 0x12d   : > { %s346_s26 = sshll.u32 %s696_s19, 4  ;;  %s348_s29 = sshll.u32 %s898_s2, 4  ;;  %s347_s26 = int_to_ptr.vmem [resolvable:$true] %s346_s26  ;;  %s349_s29 = int_to_ptr.hbm [resolvable:$true] %s348_s29 }
 0x12e   : > { %477 = dma.vmem_to_hbm [thread:$0]  (%p492_p12), %s347_s26, 16, %s349_s29, [#allocation6]  }
 0x12f   : > { %s360_s9 = sshll.u32 %s899_s3, 4  ;;  %s697_s10 = smov [#allocation10]   ;;  %s361_s9 = int_to_ptr.hbm [resolvable:$true] %s360_s9 }
 0x130   : > { %s358_s15 = sshll.u32 %s697_s10, 4  ;;  %s359_s15 = int_to_ptr.vmem [resolvable:$true] %s358_s15 }
 0x131   : > { %479 = dma.vmem_to_hbm [thread:$0]  (%p492_p12), %s359_s15, 16, %s361_s9, [#allocation11]  }
 0x132   : > { %672 = dma.done.wait (%p492_p12), [#allocation6], 16  }
 0x133   : > { %674 = vsyncadd (%p492_p12), [#allocation6], 4294967280 }
 0x134   : > { %676 = dma.done.wait (%p492_p12), [#allocation11], 16  }
 0x135   : > { %678 = vsyncadd (%p492_p12), [#allocation11], 4294967280 }
 0x136 PF: > { %p19_p2 = scmp.ge.s32.totalorder %s740_s17, 6   ;;  %s904_s12 = smov %s685_s13 }
 0x137   : > { %s905_s13 = smov %s689_s14  ;;  %s906_s14 = smov %s750_s20 }
 0x138   : > { %s907_s15 = smov %s740_s17  ;;  %21 = sbr.rel (!%p19_p2) target bundleno = 7 (0x7), region = 94 }
 0x13d   :  { %379 = vsyncpa [#allocation5], 1 }
 0x13e   :  { %381 = vsyncpa [#allocation5 + $0x1], 1 }
 0x13f   :  { %382 = vsyncpa [#allocation8], 1 }
 0x140   :  { %384 = vsyncpa [#allocation8 + $0x1], 1 }
 0x141   :  { %385 = vsyncpa [#allocation6], 1 }
 0x142   :  { %387 = vsyncpa [#allocation6 + $0x1], 1 }
 0x143   :  { %388 = vsyncpa [#allocation11], 1 }

</bundles_post_ra>
